<compile_context>
chip_gen: v5e
topology: v5e:2x2
jax: 0.10.0
libtpu: 0.0.40
codegen_flags: <defaults>
</compile_context>

<pallas_src>
import functools

import jax
import jax.numpy as jnp
from jax.experimental import pallas as pl
from jax.experimental.pallas import tpu as pltpu

_MIB = 1 << 20


# ----------------------------------------------------------------------------
# Fused per-bucket encoder/decoder kernel.
# Grid = (site_in_bucket, batch_tile).  Per invocation:
#   h   = bf16(x) @ WtT_bf16 + bt          abstraction       (BT, H)  f32
#   y   = bf16(h) @ WdT_bf16 + bd          reconstruction    (BT, D)  f32
#   sse = sum_d (y - x)^2                  fused l2 numerator (BT, 1) f32
# ----------------------------------------------------------------------------
def _fused_enc_dec_kernel(x_ref, wt_ref, bt_ref, wd_ref, bd_ref,
                          h_ref, y_ref, sse_ref):
    x = x_ref[0]                                              # (BT, D)
    x_mx = x.astype(jnp.bfloat16)                             # bf16 MXU operand
    h = jnp.dot(x_mx, wt_ref[0],
                preferred_element_type=jnp.float32) + bt_ref[0]
    h_ref[0] = h.astype(h_ref.dtype)                          # (BT, H)
    y = jnp.dot(h.astype(jnp.bfloat16), wd_ref[0],
                preferred_element_type=jnp.float32) + bd_ref[0]
    y_ref[0] = y.astype(y_ref.dtype)                          # (BT, D)
    d = y - x.astype(jnp.float32)
    sse_ref[0] = jnp.sum(d * d, axis=-1, keepdims=True)       # (BT, 1)


@jax.jit
def _bucket_forward(x_stack, wt, bt, wd, bd):
    S, B, D = x_stack.shape
    H = wt.shape[2]
    BT = B if B <= 256 else 256                 # batch tile (>=8-divisible)
    MT = pl.cdiv(B, BT)

    # Explicit VMEM budget from the chosen block sizes (2x for double
    # buffering + headroom), capped at v7x's 64 MiB physical VMEM.
    blk_bytes = (BT * D * x_stack.dtype.itemsize            # x tile
                 + (D * H + H * D) * wt.dtype.itemsize      # bf16 weights
                 + (H + D) * 4                               # biases
                 + BT * (H + D + 1) * 4)                     # h, y, sse tiles
    vmem_limit = int(min(64 * _MIB, max(32 * _MIB, 2 * blk_bytes + 8 * _MIB)))

    bytes_accessed = (x_stack.size * x_stack.dtype.itemsize
                      + (wt.size + wd.size) * wt.dtype.itemsize
                      + (bt.size + bd.size) * 4
                      + S * B * (H + D + 1) * 4)

    # TODO(synk): use pltpu.CORE_PARALLEL on the batch axis for v7x's 2nd
    # TensorCore, an fp8 weight path (v7x only), and split encoder/decoder
    # into K/N-tiled calls once a site's bf16 weights exceed the VMEM budget.
    return pl.pallas_call(
        _fused_enc_dec_kernel,
        out_shape=(
            jax.ShapeDtypeStruct((S, B, H), jnp.float32),   # abstractions
            jax.ShapeDtypeStruct((S, B, D), jnp.float32),   # reconstructions
            jax.ShapeDtypeStruct((S, B, 1), jnp.float32),   # recon SSE
        ),
        grid=(S, MT),
        in_specs=[
            pl.BlockSpec((1, BT, D), lambda s, m: (s, m, 0)),   # x
            pl.BlockSpec((1, D, H), lambda s, m: (s, 0, 0)),    # WtT (bf16)
            pl.BlockSpec((1, 1, H), lambda s, m: (s, 0, 0)),    # bt
            pl.BlockSpec((1, H, D), lambda s, m: (s, 0, 0)),    # WdT (bf16)
            pl.BlockSpec((1, 1, D), lambda s, m: (s, 0, 0)),    # bd
        ],
        out_specs=(
            pl.BlockSpec((1, BT, H), lambda s, m: (s, m, 0)),
            pl.BlockSpec((1, BT, D), lambda s, m: (s, m, 0)),
            pl.BlockSpec((1, BT, 1), lambda s, m: (s, m, 0)),
        ),
        compiler_params=pltpu.CompilerParams(
            dimension_semantics=("parallel", "parallel"),
            vmem_limit_bytes=vmem_limit),
        cost_estimate=pl.CostEstimate(
            flops=4 * S * B * D * H,
            transcendentals=0,
            bytes_accessed=int(bytes_accessed)),
    )(x_stack, wt, bt, wd, bd)


# ----------------------------------------------------------------------------
# Standalone l2_loss (module.loss_fn(name)): tiled reduction over the
# flattened feature dim; no wrapper-side pad copies, ragged tail masked
# in-kernel, batch tiled on a leading "parallel" axis, reduction axis last.
# ----------------------------------------------------------------------------
def _l2_loss_kernel(a_ref, b_ref, o_ref, *, d_total, dt, need_mask):
    k = pl.program_id(1)

    @pl.when(k == 0)
    def _():
        o_ref[...] = jnp.zeros_like(o_ref)

    d = a_ref[...].astype(jnp.float32) - b_ref[...].astype(jnp.float32)
    if need_mask:  # mask the ragged tail of the last feature tile
        col = k * dt + jax.lax.broadcasted_iota(jnp.int32, d.shape, 1)
        d = jnp.where(col < d_total, d, 0.0)
    o_ref[...] += jnp.sum(d * d, axis=-1, keepdims=True)

    @pl.when(k == pl.num_programs(1) - 1)
    def _():
        o_ref[...] = o_ref[...] * (1.0 / d_total)


@jax.jit
def l2_loss(inp, tgt):
    assert inp.shape == tgt.shape
    B = inp.shape[0]
    a = inp.reshape(B, -1)
    b = tgt.reshape(B, -1)
    D = a.shape[1]
    DT = D if D <= 512 else 512              # lane tile (full-dim or 512)
    BT = B if B <= 256 else 256              # batch tile
    grid = (pl.cdiv(B, BT), pl.cdiv(D, DT))
    need_mask = (D % DT) != 0
    blk_bytes = 2 * BT * DT * 4 + BT * 4
    vmem_limit = int(min(64 * _MIB, max(32 * _MIB, 2 * blk_bytes + 8 * _MIB)))
    out = pl.pallas_call(
        functools.partial(_l2_loss_kernel, d_total=D, dt=DT,
                          need_mask=need_mask),
        out_shape=jax.ShapeDtypeStruct((B, 1), jnp.float32),
        grid=grid,
        in_specs=[pl.BlockSpec((BT, DT), lambda m, k: (m, k)),
                  pl.BlockSpec((BT, DT), lambda m, k: (m, k))],
        out_specs=pl.BlockSpec((BT, 1), lambda m, k: (m, 0)),
        compiler_params=pltpu.CompilerParams(
            dimension_semantics=("parallel", "arbitrary"),
            vmem_limit_bytes=vmem_limit),
    )(a, b)
    return out[:, 0]                                          # (B,)


# ----------------------------------------------------------------------------
# AutoencoderAbstraction module (JAX side).
# ----------------------------------------------------------------------------
class AutoencoderAbstraction:
    """Per name: tau_map = (Wt, bt) with Wt:(H,D); decoder = (Wd, bd) with
    Wd:(D,H) (torch.nn.Linear layout).  Sites are bucketed by their exact
    (D, H); weights are pre-transposed, cast to bf16 and stacked per bucket
    once at construction, so forward() is one fused pallas_call per bucket.
    Names may contain '.' (the '/'-encoding of _ModuleDict is a key-naming
    detail and irrelevant here)."""

    def __init__(self, tau_maps: dict, decoders: dict):
        assert tau_maps.keys() == decoders.keys()
        for name in tau_maps:
            assert "/" not in name, "names can't contain '/'"
        self.names = list(tau_maps.keys())
        self.site_dims = {}
        groups = {}
        for name in self.names:
            wt, _ = tau_maps[name]
            d, h = int(wt.shape[1]), int(wt.shape[0])
            self.site_dims[name] = (d, h)
            groups.setdefault((d, h), []).append(name)

        self._buckets = []
        for (d, h), names in groups.items():
            wt_l, bt_l, wd_l, bd_l = [], [], [], []
            for n in names:
                wt, bt = tau_maps[n]                 # (H, D), (H,)
                wd, bd = decoders[n]                 # (D, H), (D,)
                assert wt.shape == (h, d) and wd.shape == (d, h)
                # Transpose once + cast matmul operands to bf16; biases f32.
                wt_l.append(jnp.asarray(wt, jnp.float32).T.astype(jnp.bfloat16))
                bt_l.append(jnp.asarray(bt, jnp.float32).reshape(1, h))
                wd_l.append(jnp.asarray(wd, jnp.float32).T.astype(jnp.bfloat16))
                bd_l.append(jnp.asarray(bd, jnp.float32).reshape(1, d))
            self._buckets.append(dict(
                names=names, D=d, H=h,
                wt=jnp.stack(wt_l), bt=jnp.stack(bt_l),
                wd=jnp.stack(wd_l), bd=jnp.stack(bd_l)))

    def loss_fn(self, name: str):
        return l2_loss

    def forward(self, inputs, activations: dict):
        abstractions, reconstructed, _ = self.forward_with_losses(
            inputs, activations)
        return abstractions, reconstructed

    def forward_with_losses(self, inputs, activations: dict):
        abstractions, reconstructed, losses = {}, {}, {}
        for bucket in self._buckets:
            d, names = bucket["D"], bucket["names"]
            xs = [activations[n].reshape(activations[n].shape[0], -1)
                  for n in names]
            for x in xs:
                assert x.shape[1] == d
            x_stack = xs[0][None] if len(xs) == 1 else jnp.stack(xs, axis=0)
            h_all, y_all, sse_all = _bucket_forward(
                x_stack, bucket["wt"], bucket["bt"],
                bucket["wd"], bucket["bd"])
            for i, n in enumerate(names):
                abstractions[n] = h_all[i]
                reconstructed[n] = y_all[i]
                losses[n] = sse_all[i, :, 0] * (1.0 / d)
        return abstractions, reconstructed, losses


# ----------------------------------------------------------------------------
# Deterministic parameter init + pure-JAX reference (bf16-rounded operands,
# f32 accumulate — matches the kernel's numerics) for validation only.
# ----------------------------------------------------------------------------
def _init_linear(key, out_f, in_f):
    kw, kb = jax.random.split(key)
    bound = 1.0 / jnp.sqrt(in_f)
    w = jax.random.uniform(kw, (out_f, in_f), jnp.float32, -bound, bound)
    b = jax.random.uniform(kb, (out_f,), jnp.float32, -bound, bound)
    return w, b


def _bf16r(a):
    return jnp.asarray(a, jnp.float32).astype(jnp.bfloat16).astype(jnp.float32)


def _reference_forward(activations, tau_maps, decoders):
    abstractions, reconstructed = {}, {}
    for name, (wt, bt) in tau_maps.items():
        wd, bd = decoders[name]
        x = _bf16r(activations[name])
        h = x @ _bf16r(wt).T + jnp.asarray(bt, jnp.float32)
        y = _bf16r(h) @ _bf16r(wd).T + jnp.asarray(bd, jnp.float32)
        abstractions[name] = h
        reconstructed[name] = y
    return abstractions, reconstructed


if __name__ == "__main__":
    key = jax.random.PRNGKey(0)

    # Three activation sites; two share (D, H) and land in the same bucket.
    specs = {
        "layers.0.output": (128, 32),   # (activation_dim, abstraction_dim)
        "layers.1.output": (64, 16),
        "layers.2.output": (128, 32),
    }
    B = 8

    tau_maps, decoders, activations = {}, {}, {}
    keys = jax.random.split(key, 3 * len(specs))
    for i, (name, (d, h)) in enumerate(specs.items()):
        k_act, k_enc, k_dec = keys[3 * i], keys[3 * i + 1], keys[3 * i + 2]
        activations[name] = jax.random.normal(k_act, (B, d), jnp.float32)
        tau_maps[name] = _init_linear(k_enc, h, d)      # Wt:(H,D), bt:(H,)
        decoders[name] = _init_linear(k_dec, d, h)      # Wd:(D,H), bd:(D,)

    model = AutoencoderAbstraction(tau_maps, decoders)

    abstractions, reconstructed = model.forward(None, activations)
    jax.block_until_ready(abstractions)
    jax.block_until_ready(reconstructed)

    # Validate against a bf16-operand / f32-accumulate reference.
    ref_abs, ref_rec = _reference_forward(activations, tau_maps, decoders)
    for name, (d, h) in specs.items():
        assert abstractions[name].shape == (B, h)
        assert reconstructed[name].shape == (B, d)
        assert jnp.allclose(abstractions[name], ref_abs[name],
                            atol=1e-2, rtol=1e-2)
        assert jnp.allclose(reconstructed[name], ref_rec[name],
                            atol=1e-2, rtol=1e-2)

    # Fused recon losses (train-time path) and standalone loss_fn kernel,
    # both checked against the kernel's own reconstruction (isolates the
    # reduction numerics from the bf16 matmul rounding).
    _, _, fused_losses = model.forward_with_losses(None, activations)
    jax.block_until_ready(fused_losses)
    for name, (d, h) in specs.items():
        per_row = jnp.mean((reconstructed[name] - activations[name]) ** 2,
                           axis=1)
        loss = model.loss_fn(name)(reconstructed[name], activations[name])
        jax.block_until_ready(loss)
        assert loss.shape == (B,)
        assert jnp.allclose(loss, per_row, atol=1e-5, rtol=1e-4)
        assert fused_losses[name].shape == (B,)
        assert jnp.allclose(fused_losses[name], per_row, atol=1e-5, rtol=1e-4)

    # Exercise the tiled-reduction + ragged-tail-mask path of l2_loss.
    ka, kb = jax.random.split(jax.random.PRNGKey(1))
    a = jax.random.normal(ka, (B, 1300), jnp.float32)
    b = jax.random.normal(kb, (B, 1300), jnp.float32)
    got = l2_loss(a, b)
    jax.block_until_ready(got)
    want = jnp.mean((a - b) ** 2, axis=1)
    assert got.shape == (B,)
    assert jnp.allclose(got, want, atol=1e-4, rtol=1e-4)

    print("KERNEL_OK")
</pallas_src>

<mosaic_0001>
module attributes {stable_mosaic.version = 11 : i64} {
  func.func @_fused_enc_dec_kernel(%arg0: i32, %arg1: i32, %arg2: memref<1x8x128xf32, #tpu.memory_space<vmem>>, %arg3: memref<1x128x32xbf16, #tpu.memory_space<vmem>>, %arg4: memref<1x1x32xf32, #tpu.memory_space<vmem>>, %arg5: memref<1x32x128xbf16, #tpu.memory_space<vmem>>, %arg6: memref<1x1x128xf32, #tpu.memory_space<vmem>>, %arg7: memref<1x8x32xf32, #tpu.memory_space<vmem>>, %arg8: memref<1x8x128xf32, #tpu.memory_space<vmem>>, %arg9: memref<1x8x1xf32, #tpu.memory_space<vmem>>) attributes {dimension_semantics = [#tpu.dimension_semantics<parallel>, #tpu.dimension_semantics<parallel>], iteration_bounds = array<i64: 2, 1>, scalar_prefetch = 0 : i64, scratch_operands = 0 : i64, tpu.core_type = #tpu.core_type<tc>, window_params = [{transform_indices = @transform_0, window_bounds = array<i64: 1, 8, 128>}, {transform_indices = @transform_1, window_bounds = array<i64: 1, 128, 32>}, {transform_indices = @transform_2, window_bounds = array<i64: 1, 1, 32>}, {transform_indices = @transform_3, window_bounds = array<i64: 1, 32, 128>}, {transform_indices = @transform_4, window_bounds = array<i64: 1, 1, 128>}, {transform_indices = @transform_5, window_bounds = array<i64: 1, 8, 32>}, {transform_indices = @transform_6, window_bounds = array<i64: 1, 8, 128>}, {transform_indices = @transform_7, window_bounds = array<i64: 1, 8, 1>}]} {
    %c0 = arith.constant 0 : index
    %c0_0 = arith.constant 0 : index
    %c0_1 = arith.constant 0 : index
    %0 = vector.load %arg2[%c0, %c0_0, %c0_1] : memref<1x8x128xf32, #tpu.memory_space<vmem>>, vector<1x8x128xf32>
    %1 = vector.shape_cast %0 : vector<1x8x128xf32> to vector<8x128xf32>
    %2 = arith.truncf %1 : vector<8x128xf32> to vector<8x128xbf16>
    %c0_2 = arith.constant 0 : index
    %c0_3 = arith.constant 0 : index
    %c0_4 = arith.constant 0 : index
    %3 = vector.load %arg3[%c0_2, %c0_3, %c0_4] : memref<1x128x32xbf16, #tpu.memory_space<vmem>>, vector<1x128x32xbf16>
    %4 = vector.shape_cast %3 : vector<1x128x32xbf16> to vector<128x32xbf16>
    %cst = arith.constant dense<0.000000e+00> : vector<8x32xf32>
    %5 = tpu.matmul %2, %4, %cst {dimension_numbers = #tpu.dot_dimension_numbers<[1], [0], [0], [1], [0, 0, 1, 1], [], []>} : vector<8x128xbf16>, vector<128x32xbf16>, vector<8x32xf32> -> vector<8x32xf32>
    %c0_5 = arith.constant 0 : index
    %c0_6 = arith.constant 0 : index
    %c0_7 = arith.constant 0 : index
    %6 = vector.load %arg4[%c0_5, %c0_6, %c0_7] : memref<1x1x32xf32, #tpu.memory_space<vmem>>, vector<1x1x32xf32>
    %7 = vector.shape_cast %6 : vector<1x1x32xf32> to vector<1x32xf32>
    %8 = vector.broadcast %7 : vector<1x32xf32> to vector<8x32xf32>
    %9 = arith.addf %5, %8 : vector<8x32xf32>
    %c0_8 = arith.constant 0 : index
    %c0_9 = arith.constant 0 : index
    %c0_10 = arith.constant 0 : index
    %10 = vector.load %arg7[%c0_8, %c0_9, %c0_10] : memref<1x8x32xf32, #tpu.memory_space<vmem>>, vector<1x8x32xf32>
    %11 = vector.shape_cast %10 : vector<1x8x32xf32> to vector<8x32xf32>
    %12 = vector.shape_cast %9 : vector<8x32xf32> to vector<1x8x32xf32>
    tpu.vector_store %arg7[%c0_8, %c0_9, %c0_10], %12 {strides = array<i32>} : memref<1x8x32xf32, #tpu.memory_space<vmem>>, vector<1x8x32xf32>,
    %13 = arith.truncf %9 : vector<8x32xf32> to vector<8x32xbf16>
    %c0_11 = arith.constant 0 : index
    %c0_12 = arith.constant 0 : index
    %c0_13 = arith.constant 0 : index
    %14 = vector.load %arg5[%c0_11, %c0_12, %c0_13] : memref<1x32x128xbf16, #tpu.memory_space<vmem>>, vector<1x32x128xbf16>
    %15 = vector.shape_cast %14 : vector<1x32x128xbf16> to vector<32x128xbf16>
    %cst_14 = arith.constant dense<0.000000e+00> : vector<8x128xf32>
    %16 = tpu.matmul %13, %15, %cst_14 {dimension_numbers = #tpu.dot_dimension_numbers<[1], [0], [0], [1], [0, 0, 1, 1], [], []>} : vector<8x32xbf16>, vector<32x128xbf16>, vector<8x128xf32> -> vector<8x128xf32>
    %c0_15 = arith.constant 0 : index
    %c0_16 = arith.constant 0 : index
    %c0_17 = arith.constant 0 : index
    %17 = vector.load %arg6[%c0_15, %c0_16, %c0_17] : memref<1x1x128xf32, #tpu.memory_space<vmem>>, vector<1x1x128xf32>
    %18 = vector.shape_cast %17 : vector<1x1x128xf32> to vector<1x128xf32>
    %19 = vector.broadcast %18 : vector<1x128xf32> to vector<8x128xf32>
    %20 = arith.addf %16, %19 : vector<8x128xf32>
    %c0_18 = arith.constant 0 : index
    %c0_19 = arith.constant 0 : index
    %c0_20 = arith.constant 0 : index
    %21 = vector.load %arg8[%c0_18, %c0_19, %c0_20] : memref<1x8x128xf32, #tpu.memory_space<vmem>>, vector<1x8x128xf32>
    %22 = vector.shape_cast %21 : vector<1x8x128xf32> to vector<8x128xf32>
    %23 = vector.shape_cast %20 : vector<8x128xf32> to vector<1x8x128xf32>
    tpu.vector_store %arg8[%c0_18, %c0_19, %c0_20], %23 {strides = array<i32>} : memref<1x8x128xf32, #tpu.memory_space<vmem>>, vector<1x8x128xf32>,
    %24 = arith.subf %20, %1 : vector<8x128xf32>
    %25 = arith.mulf %24, %24 : vector<8x128xf32>
    %cst_21 = arith.constant dense<0.000000e+00> : vector<8xf32>
    %26 = vector.multi_reduction <add>, %25, %cst_21 [1] : vector<8x128xf32> to vector<8xf32>
    %27 = vector.shape_cast %26 : vector<8xf32> to vector<8x1xf32>
    %c0_22 = arith.constant 0 : index
    %c0_23 = arith.constant 0 : index
    %c0_24 = arith.constant 0 : index
    %28 = vector.load %arg9[%c0_22, %c0_23, %c0_24] : memref<1x8x1xf32, #tpu.memory_space<vmem>>, vector<1x8x1xf32>
    %29 = vector.shape_cast %28 : vector<1x8x1xf32> to vector<8x1xf32>
    %30 = vector.shape_cast %27 : vector<8x1xf32> to vector<1x8x1xf32>
    tpu.vector_store %arg9[%c0_22, %c0_23, %c0_24], %30 {strides = array<i32>} : memref<1x8x1xf32, #tpu.memory_space<vmem>>, vector<1x8x1xf32>,
    return
  }
  func.func @transform_0(%arg0: i32, %arg1: i32) -> (i32, i32, i32) {
    %c0_i32 = arith.constant 0 : i32
    %c0_i32_0 = arith.constant 0 : i32
    return %arg0, %arg1, %c0_i32 : i32, i32, i32
  }
  func.func @transform_1(%arg0: i32, %arg1: i32) -> (i32, i32, i32) {
    %c0_i32 = arith.constant 0 : i32
    %c0_i32_0 = arith.constant 0 : i32
    %c0_i32_1 = arith.constant 0 : i32
    return %arg0, %c0_i32, %c0_i32_0 : i32, i32, i32
  }
  func.func @transform_2(%arg0: i32, %arg1: i32) -> (i32, i32, i32) {
    %c0_i32 = arith.constant 0 : i32
    %c0_i32_0 = arith.constant 0 : i32
    %c0_i32_1 = arith.constant 0 : i32
    return %arg0, %c0_i32, %c0_i32_0 : i32, i32, i32
  }
  func.func @transform_3(%arg0: i32, %arg1: i32) -> (i32, i32, i32) {
    %c0_i32 = arith.constant 0 : i32
    %c0_i32_0 = arith.constant 0 : i32
    %c0_i32_1 = arith.constant 0 : i32
    return %arg0, %c0_i32, %c0_i32_0 : i32, i32, i32
  }
  func.func @transform_4(%arg0: i32, %arg1: i32) -> (i32, i32, i32) {
    %c0_i32 = arith.constant 0 : i32
    %c0_i32_0 = arith.constant 0 : i32
    %c0_i32_1 = arith.constant 0 : i32
    return %arg0, %c0_i32, %c0_i32_0 : i32, i32, i32
  }
  func.func @transform_5(%arg0: i32, %arg1: i32) -> (i32, i32, i32) {
    %c0_i32 = arith.constant 0 : i32
    %c0_i32_0 = arith.constant 0 : i32
    return %arg0, %arg1, %c0_i32 : i32, i32, i32
  }
  func.func @transform_6(%arg0: i32, %arg1: i32) -> (i32, i32, i32) {
    %c0_i32 = arith.constant 0 : i32
    %c0_i32_0 = arith.constant 0 : i32
    return %arg0, %arg1, %c0_i32 : i32, i32, i32
  }
  func.func @transform_7(%arg0: i32, %arg1: i32) -> (i32, i32, i32) {
    %c0_i32 = arith.constant 0 : i32
    %c0_i32_0 = arith.constant 0 : i32
    return %arg0, %arg1, %c0_i32 : i32, i32, i32
  }
}

</mosaic_0001>

<bundles_post_ra>
// kernel: _bucket_forward.1
= control target key start
LH: loop header
LB: loop body
LE: loop exit
PB: predicated region body
PF: predicated region fallthrough
CT: control target
= control target key end

     0   :  { %s1189_s0 = inlined_call_operand.vmem [shape: f32[2,8,128], index: 0, kind: input, shape index: {}]   ;;  %s1190_s1 = inlined_call_operand.vmem [shape: bf16[2,128,32], index: 1, kind: input, shape index: {}]   ;;  %s1191_s2 = inlined_call_operand.vmem [shape: f32[2,1,32], index: 2, kind: input, shape index: {}]   ;;  %s1192_s3 = inlined_call_operand.vmem [shape: bf16[2,32,128], index: 3, kind: input, shape index: {}]   ;;  %s1193_s4 = inlined_call_operand.vmem [shape: f32[2,1,128], index: 4, kind: input, shape index: {}]   ;;  %s1194_s5 = inlined_call_operand.hbm [shape: f32[2,8,32], index: 5, kind: output, shape index: {0}]   ;;  %s1195_s6 = inlined_call_operand.hbm [shape: f32[2,8,128], index: 6, kind: output, shape index: {1}]   ;;  %s1196_s7 = inlined_call_operand.vmem [shape: f32[2,8,1], index: 7, kind: output, shape index: {2}]  }
   0x1   :  { %1199 = sst [smem:[#allocation8_spill]] %s1189_s0 }
   0x2   :  { %1200 = sst [smem:[#allocation9_spill]] %s1190_s1 }
   0x3   :  { %1201 = sst [smem:[#allocation10_spill]] %s1191_s2 }
   0x4   :  { %13 = vsyncpa [#allocation3], 0 }
   0x5   :  { %15 = vsyncpa [#allocation3 + $0x1], 0 }
   0x6   :  { %16 = vsyncpa [#allocation5], 0 }
   0x7   :  { %18 = vsyncpa [#allocation5 + $0x1], 0  ;;  %s1039_s24 = smov 0   ;;  %s1041_s25 = smov 0  }
   0x8   :  { %s1043_s26 = smov 0   ;;  %s1045_s27 = smov 0  }
   0x9   :  { %s1047_s28 = smov 0   ;;  %s1049_s29 = smov 0  }
   0xa LB: > { %s753_s30 = sadd.s32 4294967295, %s997_s29   ;;  %s754_s8 = sadd.s32 4294967294, %s997_s29   ;;  %s997_s29 = sphi %s1049_s29, %s24_s29   ;;  %s993_s28 = sphi %s1047_s28, %s1214_s28   ;;  %s989_s27 = sphi %s1045_s27, %s1213_s27   ;;  %s985_s26 = sphi %s1043_s26, %s1212_s26   ;;  %s981_s25 = sphi %s1041_s25, %s1211_s25   ;;  %s977_s24 = sphi %s1039_s24, %s1210_s24  }
   0xb   : > { %s36_s9 = sadd.s32 1, %s993_s28  ;;  %s177_s10 = sadd.s32 1, %s985_s26 }
   0xc   : > { %p38_p0 = scmp.ge.s32.totalorder %s36_s9, 2  ;;  %p187_p1 = scmp.ne.s32.totalorder %s985_s26, %s981_s25 }
   0xd   : > { %p188_p2 = scmp.eq.s32.totalorder %s753_s30, 1  ;;  %p193_p3 = scmp.ne.s32.totalorder %s981_s25, %s977_s24 }
   0xe   : > { %s1216_s9 = smov (%p38_p0, %s36_s9), 0  ;;  %p194_p5 = scmp.eq.s32.totalorder %s754_s8, 1 }
   0xf   : > { %p1079_p4 = por %p188_p2, %p187_p1  ;;  %s172_s12 = ssub.s32 %s993_s28, %s1216_s9 }
  0x10   : > { %p757_p6 = scmp.ge.s32.totalorder %s997_s29, 1  ;;  %p175_p7 = scmp.eq.s32.totalorder %s172_s12, 0 }
  0x11   : > { %p1086_p8 = por %p194_p5, %p193_p3  ;;  %p306_p9 = scmp.lt.s32.totalorder %s997_s29, 3 }
  0x12   : > { %s1092_s14 = scalar_select %p175_p7, %s985_s26, %s177_s10  }
  0x13   : > { %p307_p10 = pnand %p757_p6, %p306_p9 }
  0x14   : > { %p368_p11 = scmp.lt.s32.totalorder (!%p307_p10), %s989_s27, 1  ;;  %s1204_s1 = sld [smem:[#allocation9_spill]] (!%p307_p10) }
  0x15   : > { %310 = sbr.rel (%p307_p10) target bundleno = 441 (0x1b9), region = 40  ;;  %s1205_s2 = sld [smem:[#allocation10_spill]] (!%p307_p10) }
  0x16   : > { %s1206_s0 = sld [smem:[#allocation8_spill]] (!%p307_p10)  ;;  %s1121_s30 = sand.u32 (!%p307_p10), 1, %s981_s25  }
  0x17   : > { %s1198_s8 = sshll.u32 (!%p307_p10), %s1121_s30, 3 }
  0x1a   : > { %s1096_s15 = scalar_select %p368_p11, %s989_s27, 1  ;;  %vm482_vm0 = vcmask 261120  }
  0x1c   : > { %s813_s16 = sshll.u32 %s1096_s15, 6  ;;  %s814_s20 = sshll.u32 %s1096_s15, 4 }
  0x1d   : > { %s379_s19 = scalar_lea.vmem %s1204_s1, %s813_s16  ;;  %s387_s23 = scalar_lea.vmem %s1192_s3, %s814_s20 }
  0x1e   : > { %v822_v0 = vld [vmem:[%s379_s19 + $0x38] sm:$0xff]  ;;  %v821_v1 = vld [vmem:[%s379_s19 + $0x30] sm:$0xff]  ;;  %s382_s10 = scalar_lea.vmem %s1205_s2, %s1096_s15  ;;  %v824_v2 = vld [vmem:[%s387_s23 + $0x8] sm:$0xff]  ;;  %s1197_s12 = sshll.u32 %s1096_s15, 3 }
  0x1f   : > { %469 = vmatpush.bf16.msra.mxu0 %v822_v0  ;;  %514 = vmatpush.bf16.msra.mxu1 %v824_v2  ;;  %v820_v3 = vld [vmem:[%s379_s19 + $0x28] sm:$0xff]  ;;  %v819_v4 = vld [vmem:[%s379_s19 + $0x20] sm:$0xff]  ;;  %v818_v5 = vld [vmem:[%s379_s19 + $0x18] sm:$0xff]  ;;  %s374_s18 = scalar_lea.vmem %s1206_s0, %s1197_s12  ;;  %s809_s16 = sshll.u32 %s989_s27, 3 }
  0x20   : > { %v817_v6 = vld [vmem:[%s379_s19 + $0x10] sm:$0xff]  ;;  %v816_v7 = vld [vmem:[%s379_s19 + $0x8] sm:$0xff]  ;;  %v815_v8 = vld [vmem:[%s379_s19] sm:$0xff]  ;;  %s351_s19 = scalar_lea.vmem [#allocation2], %s1198_s8  ;;  %s567_s22 = scalar_lea.hbm %s1195_s6, %s809_s16 }
  0x21   : > { %v399_v9 = vld [vmem:[%s374_s18] sm:$0xff]  ;;  %s552_s18 = scalar_lea.hbm %s1194_s5, %s809_s16  ;;  %s554_s20 = sshll.u32 %s351_s19, 4  ;;  %s555_s20 = int_to_ptr.vmem [resolvable:$true] %s554_s20 }
  0x22   : > { %v400_v10 = vpack.c.bf16 %v399_v9, %v399_v9  ;;  %v823_v11 = vld [vmem:[%s387_s23] sm:$0xff]  ;;  %s556_s21 = sshll.u32 %s552_s18, 4  ;;  %s529_s0 = scalar_lea.sflag [#allocation3], %s1121_s30  ;;  %s557_s21 = int_to_ptr.hbm [resolvable:$true] %s556_s21 }
  0x23   : > { %470 = vmatpush.bf16.msra.mxu0 %v821_v1  ;;  %515 = vmatpush.bf16.msra.mxu1 %v823_v11  ;;  %v885_v12 = vld [vmem:[%s382_s10] ss:$0 sm:$0xff]  ;;  %s901_s1 = sshra.s32 %s557_s21, 4  ;;  %s907_s23 = scalar_lea.hbm %s1194_s5, 16  ;;  %s902_s1 = int_to_ptr.hbm [resolvable:$true] %s901_s1 }
  0x24   : > { %s903_s8 = scalar_lea.hbm %s902_s1, 8  ;;  %p908_p1 = scmp.lt.s32.totalorder %s902_s1, %s1194_s5 }
  0x25   : > { %p904_p12 = scmp.ne.s32.totalorder %s902_s1, %s903_s8  ;;  %p909_p2 = scmp.lt.s32.totalorder %s907_s23, %s903_s8 }
  0x27   : > { %471 = vmatpush.bf16.msra.mxu0 %v820_v3  ;;  %p905_p13 = pnand %p904_p12, %p1079_p4  ;;  %p910_p3 = por %p909_p2, %p908_p1 }
  0x29   : > { %p906_p0 = pneg %p905_p13 }
  0x2b   : > { %472 = vmatpush.bf16.msra.mxu0 %v819_v4  ;;  %p911_p5 = pnand %p910_p3, %p906_p0 }
  0x2f   : > { %473 = vmatpush.bf16.msra.mxu0 %v818_v5 }
  0x33   : > { %474 = vmatpush.bf16.msra.mxu0 %v817_v6 }
  0x37   : > { %475 = vmatpush.bf16.msra.mxu0 %v816_v7 }
  0x3b   : > { %476 = vmatpush.bf16.msra.mxu0 %v815_v8 }
  0x3e   : > { %477 = vmatmul.bf16.vlgmr.msra.gmra.mxu0 %v400_v10 }
  0xbb   : > { %v478_v13 = vpop.f32.mrf.mxu0 }
  0xbc   : > { %v479_v14 = vadd.f32 %v885_v12, %v478_v13 }
  0xbe   : > { %v484_v15 = vpack.c.bf16 %v479_v14, %v479_v14  ;;  %483 = vst.msk [vmem:[%s351_s19] sm:$0xff] %vm482_vm0, %v479_v14 }
  0xc0   : > { %806 = vmatmul.msk.bf16.vlgmr.msra.gmra.mxu1 %vm482_vm0, %v484_v15 }
  0xc3   : > { %v480_v16 = vpop.f32.mrf.mxu0 }
  0xc4   : > { %914 = shalt.err (!%p911_p5)
}
  0xc5   : > { %825 = dma.vmem_to_hbm [thread:$0]  (%p1079_p4), %s555_s20, 128, %s557_s21, %s529_s0  }
  0xc6   : > { %s1207_s18 = scalar_lea.vmem %s1193_s4, %s1096_s15  ;;  %s1208_s2 = sshll.u32 %s1121_s30, 3 }
  0xc7   : > { %v886_v17 = vld [vmem:[%s1207_s18] ss:$0 sm:$0xff]  ;;  %s358_s10 = scalar_lea.vmem [#allocation4], %s1208_s2  ;;  %s571_s1 = sshll.u32 %s567_s22, 4  ;;  %s572_s1 = int_to_ptr.hbm [resolvable:$true] %s571_s1 }
  0xc8   : > { %s569_s27 = sshll.u32 %s358_s10, 4  ;;  %s534_s8 = scalar_lea.sflag [#allocation5], %s1121_s30  ;;  %s570_s27 = int_to_ptr.vmem [resolvable:$true] %s569_s27 }
  0xc9   : > { %s929_s23 = sshra.s32 %s572_s1, 4  ;;  %s935_s19 = scalar_lea.hbm %s1195_s6, 16  ;;  %s930_s23 = int_to_ptr.hbm [resolvable:$true] %s929_s23 }
  0xca   : > { %s931_s0 = scalar_lea.hbm %s930_s23, 8  ;;  %p936_p10 = scmp.lt.s32.totalorder %s930_s23, %s1195_s6 }
  0xcb   : > { %p932_p6 = scmp.ne.s32.totalorder %s930_s23, %s931_s0  ;;  %p937_p11 = scmp.lt.s32.totalorder %s935_s19, %s931_s0 }
  0xcd   : > { %p933_p7 = pnand %p932_p6, %p1079_p4  ;;  %p938_p12 = por %p937_p11, %p936_p10 }
  0xcf   : > { %p934_p9 = pneg %p933_p7 }
  0xd1   : > { %p939_p13 = pnand %p938_p12, %p934_p9 }
 0x13d   : > { %v517_v18 = vpop.f32.mrf.mxu1 }
 0x13e   : > { %v518_v19 = vadd.f32 %v886_v17, %v517_v18 }
 0x140   : > { %521 = vst [vmem:[%s358_s10] sm:$0xff] %v518_v19  ;;  %v522_v20 = vsub.f32 %v518_v19, %v399_v9 }
 0x141   : > { %942 = shalt.err (!%p939_p13)
}
 0x142   : > { %826 = dma.vmem_to_hbm [thread:$0]  (%p1079_p4), %s570_s27, 128, %s572_s1, %s534_s8   ;;  %v523_v21 = vmul.f32 %v522_v20, %v522_v20  ;;  %vm526_vm1 = vcmask 7168  }
 0x143   : > { %s1209_s30 = sshll.u32 %s1096_s15, 3 }
 0x144   : > { %524 = vadd.xlane.f32.xlu0 %v523_v21  ;;  %s397_s18 = scalar_lea.vmem %s1196_s7, %s1209_s30 }
 0x145   : > { %v519_v22 = vpop.f32.mrf.mxu1 }
 0x1b7   : > { %v525_v23 = vpop.xlane.xlu0 %524 }
 0x1b8   : > { %527 = vst.msk [vmem:[%s397_s18] sm:$0xff] %vm526_vm1, %v525_v23 }
 0x1b9 PF: > { %p836_p0 = scmp.ge.s32.totalorder %s997_s29, 2  ;;  %s586_s2 = sand.u32 1, %s977_s24  }
 0x1ba   : > { %s587_s11 = scalar_lea.sflag [#allocation3], %s586_s2 }
 0x1bb   : > { %p830_p1 = pnand %p836_p0, %p1086_p8 }
 0x1bd   : > { %p831_p4 = pneg %p830_p1 }
 0x1bf   : > { %968 = dma.done.wait (%p831_p4), %s587_s11, 128  }
 0x1c0   : > { %970 = vsyncadd (%p831_p4), %s587_s11, 4294967168  ;;  %s597_s15 = scalar_lea.sflag [#allocation5], %s586_s2 }
 0x1c1   : > { %972 = dma.done.wait (%p831_p4), %s597_s15, 128  }
 0x1c2   : > { %974 = vsyncadd (%p831_p4), %s597_s15, 4294967168  ;;  %s24_s29 = sadd.s32 1, %s997_s29   ;;  %s1210_s24 = smov %s981_s25 }
 0x1c3   : > { %p21_p2 = scmp.ge.s32.totalorder %s24_s29, 4   ;;  %s1211_s25 = smov %s985_s26 }
 0x1c4   : > { %s1212_s26 = smov %s1092_s14  ;;  %s1213_s27 = smov %s993_s28 }
 0x1c5   : > { %s1214_s28 = smov %s1216_s9  ;;  %23 = sbr.rel (!%p21_p2) target bundleno = 10 (0xa), region = 116 }
 0x1ca   :  { %613 = vsyncpa [#allocation3], 1 }
 0x1cb   :  { %615 = vsyncpa [#allocation3 + $0x1], 1 }
 0x1cc   :  { %616 = vsyncpa [#allocation5], 1 }
 0x1cd   :  { %618 = vsyncpa [#allocation5 + $0x1], 1 }

</bundles_post_ra>
